<compile_context>
chip_gen: v6e
topology: v6e:2x2x1
jax: 0.10.0
libtpu: 0.0.40
codegen_flags: <defaults>
</compile_context>

<pallas_src>
import jax
import jax.numpy as jnp
from jax.experimental import pallas as pl
from jax.experimental.pallas import tpu as pltpu


def _round_up(x, m):
    return ((x + m - 1) // m) * m


def _make_spec(shape, index_map, buffer_count=None):
    """BlockSpec with an optional pipeline_mode=pl.Buffered(n) (best effort)."""
    if buffer_count is not None and hasattr(pl, "Buffered"):
        try:
            return pl.BlockSpec(shape, index_map, pipeline_mode=pl.Buffered(buffer_count))
        except TypeError:  # older jax without the pipeline_mode kwarg
            pass
    return pl.BlockSpec(shape, index_map)


def _vmem_budget_bytes(frac=0.75, fallback=64 * 1024 * 1024):
    """~75% of physical VMEM (v5e/v6e: ~96 MiB, v7x: ~48 MiB); safe fallback."""
    try:
        phys = int(pltpu.get_tpu_info().vmem_capacity_bytes)
    except Exception:
        phys = fallback
    return int(phys * frac)


def concat_fc_kernel(src_ref, trg_ref, w1_ref, w2_ref, b_ref, out_ref):
    # src/trg: (tm, E); w1/w2: (E, tn); b: (1, tn); out: (tm, tn).
    # Two MXU dots with f32 accumulation, f32 bias add, cast, lane-dense store.
    acc = jnp.dot(src_ref[...], w1_ref[...], preferred_element_type=jnp.float32)
    acc = acc + jnp.dot(trg_ref[...], w2_ref[...], preferred_element_type=jnp.float32)
    out_ref[...] = (acc + b_ref[...].astype(jnp.float32)).astype(out_ref.dtype)


def concat_fc(src, trg, weight, bias, *, tm_max=2048, compute_dtype=None):
    """src, trg: (B, S, E); weight: (E, 2E) (PyTorch Linear layout); bias: (E,)."""
    B, S, E = src.shape
    M = B * S
    out_dtype = src.dtype
    in_dtype = compute_dtype if compute_dtype is not None else src.dtype

    Ep = _round_up(E, 128)                      # lane-dense output columns

    src2 = src.reshape(M, E).astype(in_dtype)
    trg2 = trg.reshape(M, E).astype(in_dtype)

    # PyTorch Linear: y = x @ weight.T + bias.  Split weight.T (2E, E) in halves.
    wt = weight.T                               # (2E, E)
    w1 = wt[:E, :].astype(in_dtype)             # multiplies the `src` half
    w2 = wt[E:, :].astype(in_dtype)             # multiplies the `trg` half
    b2 = bias.reshape(1, E).astype(jnp.float32)

    if Ep != E:
        # Pad only output columns (weights / bias); activations keep K = E
        # (block dim == full array dim is legal), so no extra HBM traffic.
        pad_n = Ep - E
        w1 = jnp.pad(w1, ((0, 0), (0, pad_n)))
        w2 = jnp.pad(w2, ((0, 0), (0, pad_n)))
        b2 = jnp.pad(b2, ((0, 0), (0, pad_n)))

    in_item = jnp.dtype(in_dtype).itemsize
    out_item = jnp.dtype(out_dtype).itemsize
    b_item = 4

    budget = _vmem_budget_bytes()

    def vmem_need(tm_, tn_, resident):
        wbuf = 1 if resident else 2                       # Buffered(1) when resident
        w_bytes = wbuf * 2 * E * tn_ * in_item            # two weight halves
        b_bytes = wbuf * tn_ * b_item
        act_bytes = 2 * 2 * tm_ * E * in_item             # src + trg, double-buffered
        out_bytes = 2 * tm_ * tn_ * out_item              # double-buffered output
        return w_bytes + b_bytes + act_bytes + out_bytes

    # Upper bound on tm: fill VMEM, stay <= padded row count, and leave >= 2
    # grid steps along M so both v7x TensorCores get work.
    tm_cap = min(_round_up(tm_max, 8), _round_up(M, 8))
    if M > 8:
        tm_cap = min(tm_cap, _round_up(pl.cdiv(M, 2), 8))
    tm_cap = max(tm_cap, 8)

    # Resident weights (tn = Ep) if they fit; otherwise stream them along N.
    if vmem_need(min(256, tm_cap), Ep, resident=True) <= budget:
        tn, resident = Ep, True
    else:
        tn, resident = min(Ep, 512), False
        while tn > 128 and vmem_need(8, tn, resident=False) > budget:
            tn //= 2

    tm = tm_cap
    while tm > 8 and vmem_need(tm, tn, resident) > budget:
        tm = max(8, _round_up(tm // 2, 8))

    vmem_limit = int(min(vmem_need(tm, tn, resident) + (4 << 20), budget))

    grid = (pl.cdiv(M, tm), pl.cdiv(Ep, tn))
    w_buf = 1 if resident else None        # single-buffer only truly resident operands

    out = pl.pallas_call(
        concat_fc_kernel,
        out_shape=jax.ShapeDtypeStruct((M, Ep), out_dtype),
        grid_spec=pltpu.PrefetchScalarGridSpec(
            num_scalar_prefetch=0,
            grid=grid,
            in_specs=[
                pl.BlockSpec((tm, E), lambda i, j: (i, 0)),        # src tile
                pl.BlockSpec((tm, E), lambda i, j: (i, 0)),        # trg tile
                _make_spec((E, tn), lambda i, j: (0, j), w_buf),   # W_top
                _make_spec((E, tn), lambda i, j: (0, j), w_buf),   # W_bot
                _make_spec((1, tn), lambda i, j: (0, j), w_buf),   # bias
            ],
            out_specs=pl.BlockSpec((tm, tn), lambda i, j: (i, j)),
        ),
        compiler_params=pltpu.CompilerParams(
            # TODO(synk): on v7x, pltpu.CORE_PARALLEL on the M axis would shard the
            # grid across both TensorCores; kept as "parallel" for portability.
            dimension_semantics=("parallel", "parallel"),
            vmem_limit_bytes=vmem_limit,
        ),
    )(src2, trg2, w1, w2, b2)

    if Ep != E:
        out = out[:, :E]
    return out.reshape(B, S, E)


def reference(src, trg, weight, bias):
    x = jnp.concatenate((src, trg), axis=-1)
    return x @ weight.T + bias


if __name__ == "__main__":
    B, S, E = 2, 8, 32
    key = jax.random.PRNGKey(0)
    k_src, k_trg, k_w, k_b = jax.random.split(key, 4)

    src = jax.random.normal(k_src, (B, S, E), dtype=jnp.float32)
    trg = jax.random.normal(k_trg, (B, S, E), dtype=jnp.float32)

    # Deterministic Linear(2E -> E) params (PyTorch-style uniform init bounds).
    bound = 1.0 / (2 * E) ** 0.5
    weight = jax.random.uniform(k_w, (E, 2 * E), minval=-bound, maxval=bound,
                                dtype=jnp.float32)
    bias = jax.random.uniform(k_b, (E,), minval=-bound, maxval=bound,
                              dtype=jnp.float32)

    ref = reference(src, trg, weight, bias)

    # Default (f32) path.
    out = jax.block_until_ready(concat_fc(src, trg, weight, bias))
    assert out.shape == (B, S, E)
    assert jnp.allclose(out, ref, atol=1e-4, rtol=1e-4), "f32 path mismatch vs reference"

    # Optional bf16 compute path (halves HBM traffic; f32 accumulation).
    out_bf16 = jax.block_until_ready(
        concat_fc(src, trg, weight, bias, compute_dtype=jnp.bfloat16))
    assert out_bf16.shape == (B, S, E)
    assert jnp.allclose(out_bf16, ref, atol=5e-2, rtol=5e-2), "bf16 path mismatch vs reference"

    print("KERNEL_OK")
</pallas_src>

<mosaic_0001>
module attributes {stable_mosaic.version = 11 : i64} {
  func.func @concat_fc_kernel(%arg0: i32, %arg1: i32, %arg2: memref<8x32xf32, #tpu.memory_space<vmem>>, %arg3: memref<8x32xf32, #tpu.memory_space<vmem>>, %arg4: memref<32x128xf32, #tpu.memory_space<vmem>>, %arg5: memref<32x128xf32, #tpu.memory_space<vmem>>, %arg6: memref<1x128xf32, #tpu.memory_space<vmem>>, %arg7: memref<8x128xf32, #tpu.memory_space<vmem>>) attributes {dimension_semantics = [#tpu.dimension_semantics<parallel>, #tpu.dimension_semantics<parallel>], iteration_bounds = array<i64: 2, 1>, scalar_prefetch = 0 : i64, scratch_operands = 0 : i64, tpu.core_type = #tpu.core_type<tc>, window_params = [{transform_indices = @transform_0, window_bounds = array<i64: 8, 32>}, {transform_indices = @transform_1, window_bounds = array<i64: 8, 32>}, {pipeline_mode = #tpu.pipeline_mode<synchronous>, transform_indices = @transform_2, window_bounds = array<i64: 32, 128>}, {pipeline_mode = #tpu.pipeline_mode<synchronous>, transform_indices = @transform_3, window_bounds = array<i64: 32, 128>}, {pipeline_mode = #tpu.pipeline_mode<synchronous>, transform_indices = @transform_4, window_bounds = array<i64: 1, 128>}, {transform_indices = @transform_5, window_bounds = array<i64: 8, 128>}]} {
    %c0 = arith.constant 0 : index
    %c0_0 = arith.constant 0 : index
    %0 = vector.load %arg2[%c0, %c0_0] : memref<8x32xf32, #tpu.memory_space<vmem>>, vector<8x32xf32>
    %c0_1 = arith.constant 0 : index
    %c0_2 = arith.constant 0 : index
    %1 = vector.load %arg4[%c0_1, %c0_2] : memref<32x128xf32, #tpu.memory_space<vmem>>, vector<32x128xf32>
    %cst = arith.constant dense<0.000000e+00> : vector<8x128xf32>
    %2 = tpu.matmul %0, %1, %cst {dimension_numbers = #tpu.dot_dimension_numbers<[1], [0], [0], [1], [0, 0, 1, 1], [], []>} : vector<8x32xf32>, vector<32x128xf32>, vector<8x128xf32> -> vector<8x128xf32>
    %c0_3 = arith.constant 0 : index
    %c0_4 = arith.constant 0 : index
    %3 = vector.load %arg3[%c0_3, %c0_4] : memref<8x32xf32, #tpu.memory_space<vmem>>, vector<8x32xf32>
    %c0_5 = arith.constant 0 : index
    %c0_6 = arith.constant 0 : index
    %4 = vector.load %arg5[%c0_5, %c0_6] : memref<32x128xf32, #tpu.memory_space<vmem>>, vector<32x128xf32>
    %cst_7 = arith.constant dense<0.000000e+00> : vector<8x128xf32>
    %5 = tpu.matmul %3, %4, %cst_7 {dimension_numbers = #tpu.dot_dimension_numbers<[1], [0], [0], [1], [0, 0, 1, 1], [], []>} : vector<8x32xf32>, vector<32x128xf32>, vector<8x128xf32> -> vector<8x128xf32>
    %6 = arith.addf %2, %5 : vector<8x128xf32>
    %c0_8 = arith.constant 0 : index
    %c0_9 = arith.constant 0 : index
    %7 = vector.load %arg6[%c0_8, %c0_9] : memref<1x128xf32, #tpu.memory_space<vmem>>, vector<1x128xf32>
    %8 = vector.broadcast %7 : vector<1x128xf32> to vector<8x128xf32>
    %9 = arith.addf %6, %8 : vector<8x128xf32>
    %c0_10 = arith.constant 0 : index
    %c0_11 = arith.constant 0 : index
    %10 = vector.load %arg7[%c0_10, %c0_11] : memref<8x128xf32, #tpu.memory_space<vmem>>, vector<8x128xf32>
    tpu.vector_store %arg7[%c0_10, %c0_11], %9 {strides = array<i32>} : memref<8x128xf32, #tpu.memory_space<vmem>>, vector<8x128xf32>,
    return
  }
  func.func @transform_0(%arg0: i32, %arg1: i32) -> (i32, i32) {
    %c0_i32 = arith.constant 0 : i32
    %c0_i32_0 = arith.constant 0 : i32
    return %arg0, %c0_i32 : i32, i32
  }
  func.func @transform_1(%arg0: i32, %arg1: i32) -> (i32, i32) {
    %c0_i32 = arith.constant 0 : i32
    %c0_i32_0 = arith.constant 0 : i32
    return %arg0, %c0_i32 : i32, i32
  }
  func.func @transform_2(%arg0: i32, %arg1: i32) -> (i32, i32) {
    %c0_i32 = arith.constant 0 : i32
    %c0_i32_0 = arith.constant 0 : i32
    return %c0_i32, %arg1 : i32, i32
  }
  func.func @transform_3(%arg0: i32, %arg1: i32) -> (i32, i32) {
    %c0_i32 = arith.constant 0 : i32
    %c0_i32_0 = arith.constant 0 : i32
    return %c0_i32, %arg1 : i32, i32
  }
  func.func @transform_4(%arg0: i32, %arg1: i32) -> (i32, i32) {
    %c0_i32 = arith.constant 0 : i32
    %c0_i32_0 = arith.constant 0 : i32
    return %c0_i32, %arg1 : i32, i32
  }
  func.func @transform_5(%arg0: i32, %arg1: i32) -> (i32, i32) {
    %c0_i32 = arith.constant 0 : i32
    return %arg0, %arg1 : i32, i32
  }
}

</mosaic_0001>

<bundles_post_ra>
// kernel: tpu_custom_call.1
= control target key start
LH: loop header
LB: loop body
LE: loop exit
PB: predicated region body
PF: predicated region fallthrough
CT: control target
= control target key end

     0   :  { %s1261_s0 = inlined_call_operand.hbm [shape: f32[16,32], index: 0, kind: input, shape index: {}]   ;;  %s1262_s1 = inlined_call_operand.hbm [shape: f32[16,32], index: 1, kind: input, shape index: {}]   ;;  %s1263_s2 = inlined_call_operand.hbm [shape: f32[32,128], index: 2, kind: input, shape index: {}]   ;;  %s1264_s3 = inlined_call_operand.hbm [shape: f32[32,128], index: 3, kind: input, shape index: {}]   ;;  %s1265_s4 = inlined_call_operand.vmem [shape: f32[1,128], index: 4, kind: input, shape index: {}]   ;;  %s1266_s5 = inlined_call_operand.hbm [shape: f32[16,128], index: 5, kind: output, shape index: {}]  }
   0x1   :  { %1268 = sst [smem:[#allocation16_spill]] %s1261_s0 }
   0x2   :  { %1269 = sst [smem:[#allocation17_spill]] %s1262_s1 }
   0x3   :  { %1270 = sst [smem:[#allocation18_spill]] %s1263_s2 }
   0x4   :  { %10 = vsyncpa [#allocation3], 0 }
   0x5   :  { %12 = vsyncpa [#allocation3 + $0x1], 0 }
   0x6   :  { %13 = vsyncpa [#allocation6], 0 }
   0x7   :  { %15 = vsyncpa [#allocation6 + $0x1], 0 }
   0x8   :  { %16 = vsyncpa [#allocation9], 0 }
   0x9   :  { %17 = vsyncpa [#allocation4], 0 }
   0xa   :  { %19 = vsyncpa [#allocation4 + $0x1], 0  ;;  %s1055_s18 = smov 0   ;;  %s1057_s19 = smov 0  }
   0xb   :  { %s1059_s20 = smov 0   ;;  %s1061_s21 = smov 0  }
   0xc   :  { %s1063_s22 = smov 0   ;;  %s1065_s23 = smov 0  }
   0xd LB: > { %s1086_s24 = sadd.s32 4294967295, %s1014_s23   ;;  %s667_s25 = sadd.s32 4294967294, %s1014_s23   ;;  %s1014_s23 = sphi %s1065_s23, %s25_s23   ;;  %s1010_s22 = sphi %s1063_s22, %s1291_s22   ;;  %s1006_s21 = sphi %s1061_s21, %s1290_s21   ;;  %s1002_s20 = sphi %s1059_s20, %s1289_s20   ;;  %s998_s19 = sphi %s1057_s19, %s1288_s19   ;;  %s994_s18 = sphi %s1055_s18, %s1287_s18  }
   0xe   : > { %p57_p0 = scmp.ne.s32.totalorder %s998_s19, %s994_s18  ;;  %p1267_p1 = scmp.eq.s32.totalorder %s1086_s24, 0 }
   0xf   : > { %p193_p3 = scmp.eq.s32.totalorder %s667_s25, 1  ;;  %p668_p5 = scmp.ge.s32.totalorder %s1014_s23, 1 }
  0x10   : > { %p1095_p4 = por %p1267_p1, %p57_p0  ;;  %p200_p7 = scmp.lt.s32.totalorder %s1014_s23, 3 }
  0x11   : > { %p1100_p6 = por %p193_p3, %p57_p0  ;;  %s1016_s29 = smov [#allocation7]  }
  0x12   : > { %p1105_p8 = pnand %p668_p5, %p200_p7  ;;  %s214_s30 = sshll.u32 %s1016_s29, 4  ;;  %s215_s30 = int_to_ptr.vmem [resolvable:$true] %s214_s30 }
  0x13   : > { %s1272_s27 = scalar_select %p1100_p6, 1, 0 }
  0x14   : > { %p736_p9 = pneg %p1105_p8  ;;  %s1017_s7 = smov [#allocation8]  }
  0x15   : > { %s229_s8 = sshll.u32 %s1017_s7, 4  ;;  %s825_s9 = scalar_lea.vmem %s215_s30, 512  ;;  %s230_s8 = int_to_ptr.vmem [resolvable:$true] %s229_s8 }
  0x16   : > { %p1114_p11 = pnand %p736_p9, %p1267_p1  ;;  %p826_p13 = scmp.ne.s32.totalorder %s215_s30, %s825_s9 }
  0x17   : > { %p833_p5 = scmp.lt.s32.totalorder %s215_s30, %s215_s30  ;;  %p834_p7 = scmp.lt.s32.totalorder %s825_s9, %s825_s9 }
  0x18   : > { %p816_p12 = pneg %p1114_p11 }
  0x19   : > { %p835_p10 = por %p834_p7, %p833_p5 }
  0x1a   : > { %p828_p0 = pnand %p826_p13, %p816_p12 }
  0x1c   : > { %p829_p3 = pneg %p828_p0 }
  0x1e   : > { %p836_p9 = pnand %p835_p10, %p829_p3 }
  0x20   : > { %839 = shalt.err (!%p836_p9)
}
  0x21   : > { %s1018_s10 = smov 128   ;;  %s1019_s11 = smov 8  }
  0x22   : > { %s1275_s2 = sld [smem:[#allocation18_spill]]  ;;  %s851_s14 = scalar_lea.vmem %s230_s8, 512 }
  0x23   : > { %p852_p1 = scmp.ne.s32.totalorder %s230_s8, %s851_s14  ;;  %p859_p2 = scmp.lt.s32.totalorder %s230_s8, %s230_s8 }
  0x24   : > { %p860_p6 = scmp.lt.s32.totalorder %s851_s14, %s851_s14 }
  0x25   : > { %p854_p13 = pnand %p852_p1, %p816_p12 }
  0x26   : > { %p861_p5 = por %p860_p6, %p859_p2 }
  0x27   : > { %p855_p0 = pneg %p854_p13 }
  0x28   : > { %739 = dma.hbm_to_vmem [thread:$0]  (!%p1114_p11), %s1275_s2, 512, %s215_s30, [#allocation6], %s1018_s10, %s1018_s10, %s1019_s11  }
  0x29   : > { %p862_p10 = pnand %p861_p5, %p855_p0 }
  0x2b   : > { %865 = shalt.err (!%p862_p10)
}
  0x2c   : > { %742 = dma.hbm_to_vmem [thread:$0]  (!%p1114_p11), %s1264_s3, 512, %s230_s8, [#allocation9], %s1018_s10, %s1018_s10, %s1019_s11  }
  0x2d   : > { %s37_s17 = sadd.s32 1, %s1010_s22  ;;  %s44_s25 = sadd.s32 1, %s1002_s20 }
  0x2e   : > { %p39_p1 = scmp.ge.s32.totalorder %s37_s17, 2  ;;  %p51_p2 = scmp.ne.s32.totalorder %s1002_s20, %s998_s19 }
  0x2f   : > { %p52_p6 = scmp.eq.s32.totalorder %s1014_s23, 0  ;;  %p756_p12 = scmp.lt.s32.totalorder %s1014_s23, 2 }
  0x30   : > { %s1293_s17 = smov (%p39_p1, %s37_s17), 0  ;;  %p1276_p7 = scmp.eq.s32.totalorder %s1086_s24, 1 }
  0x31   : > { %p53_p3 = por %p52_p6, %p51_p2  ;;  %s41_s30 = ssub.s32 %s1010_s22, %s1293_s17 }
  0x32   : > { %p1146_p9 = por %p1276_p7, %p51_p2  ;;  %s249_s6 = sand.u32 1, %s1002_s20  }
  0x33   : > { %p42_p13 = scmp.eq.s32.totalorder %s41_s30, 0  ;;  %s673_s7 = sshll.u32 %s249_s6, 3 }
  0x34   : > { %s674_s8 = sshll.u32 %s1010_s22, 7  ;;  %s1278_s0 = sld [smem:[#allocation16_spill]] }
  0x35   : > { %s1155_s9 = scalar_select %p42_p13, %s1002_s20, %s44_s25  }
  0x36   : > { %s253_s13 = scalar_lea.vmem [#allocation2], %s673_s7  ;;  %p1162_p11 = pnand %p756_p12, %p53_p3 }
  0x37   : > { %s260_s14 = sshll.u32 %s253_s13, 4  ;;  %s1280_s1 = sld [smem:[#allocation17_spill]]  ;;  %s261_s14 = int_to_ptr.vmem [resolvable:$true] %s260_s14 }
  0x38   : > { %s250_s25 = scalar_lea.sflag [#allocation3], %s249_s6  ;;  %p868_p0 = pneg %p1162_p11 }
  0x39   : > { %s879_s10 = scalar_lea.vmem %s261_s14, 128  ;;  %s1020_s11 = smov [#allocation2]  }
  0x3a   : > { %s258_s12 = scalar_lea.hbm %s1278_s0, %s674_s8  ;;  %p880_p5 = scmp.ne.s32.totalorder %s261_s14, %s879_s10 }
  0x3b   : > { %s884_s13 = sshll.u32 %s1020_s11, 4  ;;  %s885_s13 = int_to_ptr.vmem [resolvable:$false] %s884_s13 }
  0x3c   : > { %p882_p10 = pnand %p880_p5, %p868_p0  ;;  %s886_s0 = scalar_lea.vmem %s885_s13, 256 }
  0x3d   : > { %s1169_s2 = scalar_lea.hbm %s1280_s1, %s674_s8  ;;  %p887_p2 = scmp.lt.s32.totalorder %s261_s14, %s885_s13 }
  0x3e   : > { %p883_p1 = pneg %p882_p10  ;;  %p888_p6 = scmp.lt.s32.totalorder %s886_s0, %s879_s10 }
  0x40   : > { %p889_p12 = por %p888_p6, %p887_p2 }
  0x42   : > { %p890_p3 = pnand %p889_p12, %p883_p1 }
  0x44   : > { %893 = shalt.err (!%p890_p3)
}
  0x45   : > { %746 = dma.hbm_to_vmem [thread:$0]  (!%p1162_p11), %s258_s12, 128, %s261_s14, %s250_s25  }
  0x46   : > { %s267_s6 = sand.u32 1, %s1014_s23   ;;  %s271_s8 = scalar_lea.vmem [#allocation5], %s673_s7 }
  0x47   : > { %s278_s16 = sshll.u32 %s271_s8, 4  ;;  %s268_s30 = scalar_lea.sflag [#allocation6], %s267_s6  ;;  %s279_s16 = int_to_ptr.vmem [resolvable:$true] %s278_s16 }
  0x48   : > { %s907_s1 = scalar_lea.vmem %s279_s16, 128  ;;  %s1021_s0 = smov [#allocation5]  }
  0x49   : > { %p908_p7 = scmp.ne.s32.totalorder %s279_s16, %s907_s1  ;;  %s912_s10 = sshll.u32 %s1021_s0, 4  ;;  %s913_s10 = int_to_ptr.vmem [resolvable:$false] %s912_s10 }
  0x4a   : > { %s914_s11 = scalar_lea.vmem %s913_s10, 256  ;;  %p915_p10 = scmp.lt.s32.totalorder %s279_s16, %s913_s10 }
  0x4b   : > { %p910_p13 = pnand %p908_p7, %p868_p0  ;;  %p916_p1 = scmp.lt.s32.totalorder %s914_s11, %s907_s1 }
  0x4d   : > { %p911_p5 = pneg %p910_p13  ;;  %p917_p2 = por %p916_p1, %p915_p10 }
  0x4f   : > { %p918_p6 = pnand %p917_p2, %p911_p5 }
  0x51   : > { %921 = shalt.err (!%p918_p6)
}
  0x52   : > { %749 = dma.hbm_to_vmem [thread:$0]  (!%p1162_p11), %s1169_s2, 128, %s279_s16, %s268_s30  }
  0x53   : > { %287 = sbr.rel (%p1105_p8) target bundleno = 318 (0x13e), region = 40  ;;  %s1188_s7 = sand.u32 (!%p1105_p8), 1, %s998_s19  }
  0x54   : > { %s1191_s12 = sshll.u32 (!%p1105_p8), %s1188_s7, 3  ;;  %s290_s1 = scalar_lea.sflag (!%p1105_p8), [#allocation3], %s1188_s7 }
  0x55   : > { %s293_s14 = scalar_lea.vmem (!%p1105_p8), [#allocation2], %s1191_s12 }
  0x58   : > { %973 = dma.done.wait (%p1095_p4), %s290_s1, 128  }
  0x59   : > { %975 = vsyncadd (%p1095_p4), %s290_s1, 4294967168  ;;  %s298_s2 = sand.u32 1, %s1086_s24   ;;  %s302_s15 = scalar_lea.vmem [#allocation5], %s1191_s12 }
  0x5a   : > { %s299_s28 = scalar_lea.sflag [#allocation6], %s298_s2 }
  0x5b   : > { %977 = dma.done.wait (%p1095_p4), %s299_s28, 128  }
  0x5c   : > { %979 = vsyncadd (%p1095_p4), %s299_s28, 4294967168  ;;  %p1281_p8 = scmp.eq.s32.totalorder %s1086_s24, 0 }
  0x5e   : > { %981 = dma.done.wait (%p1281_p8), [#allocation6], 512   ;;  %p1282_p11 = pmov %p1281_p8 }
  0x5f   : > { %p1283_p0 = pmov %p1281_p8 }
  0x60   : > { %983 = vsyncadd (%p1282_p11), [#allocation6], 4294966784 }
  0x61   : > { %985 = dma.done.wait (%p1283_p0), [#allocation9], 512   ;;  %p1284_p12 = pmov %p1283_p0 }
  0x62   : > { %v1022_v0 = vmov 0.0   ;;  %vm1023_vm0 = vmmov 0   ;;  %v357_v1 = vld [vmem:[#allocation8 + $0x18] sm:$0xff]  ;;  %v356_v3 = vld [vmem:[#allocation8 + $0x10] sm:$0xff]  ;;  %v355_v5 = vld [vmem:[#allocation8 + $0x8] sm:$0xff]  ;;  %vm358_vm1 = vcmask 261120  }
  0x63   : > { %987 = vsyncadd (%p1284_p12), [#allocation9], 4294966784  ;;  %700 = vmatprep.subr.mxu0 %v1022_v0  ;;  %711 = vmatprep.subr.mxu1 %v1022_v0  ;;  %v352_v2 = vld [vmem:[#allocation7 + $0x18] sm:$0xff]  ;;  %v351_v4 = vld [vmem:[#allocation7 + $0x10] sm:$0xff]  ;;  %s687_s25 = sshll.u32 %s1006_s21, 7  ;;  %s344_s13 = scalar_lea.vmem [#allocation10], %s1191_s12 }
  0x64   : > { %708 = vmatprep.mubr.msk.f32.mxu0 %vm1023_vm0, %v1022_v0  ;;  %719 = vmatprep.mubr.msk.f32.mxu1 %vm1023_vm0, %v1022_v0  ;;  %v350_v6 = vld [vmem:[#allocation7 + $0x8] sm:$0xff]  ;;  %v354_v7 = vld [vmem:[#allocation8] sm:$0xff]  ;;  %v353_v9 = vld [vmem:[%s302_s15] sm:$0xff]  ;;  %s529_s6 = sshll.u32 %s344_s13, 4  ;;  %s527_s30 = scalar_lea.hbm %s1266_s5, %s687_s25  ;;  %s530_s6 = int_to_ptr.vmem [resolvable:$true] %s529_s6 }
  0x65   : > { %701 = vmatpush3.msra.mxu0 %v357_v1  ;;  %712 = vmatpush3.msra.mxu1 %v352_v2  ;;  %v349_v8 = vld [vmem:[#allocation7] sm:$0xff]  ;;  %s515_s0 = scalar_lea.sflag [#allocation4], %s1188_s7  ;;  %s922_s10 = scalar_lea.vmem %s530_s6, 128 }
  0x66   : > { %702 = vmatprep.subr.mxu0 %v1022_v0  ;;  %713 = vmatprep.subr.mxu1 %v1022_v0  ;;  %v348_v10 = vld [vmem:[%s293_s14] sm:$0xff]  ;;  %p923_p4 = scmp.ne.s32.totalorder %s530_s6, %s922_s10  ;;  %s1024_s11 = smov [#allocation10]  }
  0x67   : > { %703 = vmatpush3.msra.mxu0 %v356_v3  ;;  %714 = vmatpush3.msra.mxu1 %v351_v4  ;;  %v685_v13 = vld [vmem:[%s1265_s4] ss:$0 sm:$0xff]  ;;  %s926_s21 = sshll.u32 %s1024_s11, 4  ;;  %s927_s21 = int_to_ptr.vmem [resolvable:$false] %s926_s21 }
  0x68   : > { %704 = vmatprep.subr.mxu0 %v1022_v0  ;;  %715 = vmatprep.subr.mxu1 %v1022_v0  ;;  %p924_p3 = pnand %p923_p4, %p1146_p9  ;;  %s928_s12 = scalar_lea.vmem %s927_s21, 256 }
  0x69   : > { %705 = vmatpush3.msra.mxu0 %v355_v5  ;;  %716 = vmatpush3.msra.mxu1 %v350_v6  ;;  %p929_p13 = scmp.lt.s32.totalorder %s530_s6, %s927_s21  ;;  %p930_p5 = scmp.lt.s32.totalorder %s928_s12, %s922_s10 }
  0x6a   : > { %706 = vmatprep.subr.mxu0 %v1022_v0  ;;  %717 = vmatprep.subr.mxu1 %v1022_v0  ;;  %p925_p7 = pneg %p924_p3 }
  0x6b   : > { %707 = vmatpush3.msra.mxu0 %v354_v7  ;;  %718 = vmatpush3.msra.mxu1 %v349_v8  ;;  %p931_p10 = por %p930_p5, %p929_p13 }
  0x6c   : > { %709 = vmatmul.mubr.msk.f32.vlgmr.msra.gmra.mxu0 %vm358_vm1, %v353_v9  ;;  %720 = vmatmul.mubr.msk.f32.vlgmr.msra.gmra.mxu1 %vm358_vm1, %v348_v10 }
  0x6d   : > { %p932_p1 = pnand %p931_p10, %p925_p7 }
 0x12c   : > { %v428_v11 = vpop.f32.mrf.mxu0  ;;  %v501_v12 = vpop.f32.mrf.mxu1 }
 0x12d   : > { %v502_v14 = vadd.f32 %v501_v12, %v428_v11 }
 0x12e   : > { %v710_v15 = vpop.f32.mrf.mxu0  ;;  %v721_v16 = vpop.f32.mrf.mxu1 }
 0x12f   : > { %v512_v17 = vadd.f32 %v685_v13, %v502_v14 }
 0x131   : > { %513 = vst [vmem:[%s344_s13] sm:$0xff] %v512_v17 }
 0x132   : > { %935 = shalt.err (!%p932_p1)
}
 0x133   : > { %s936_s1 = scalar_lea.hbm %s527_s30, 128  ;;  %s940_s2 = scalar_lea.hbm %s1266_s5, 256 }
 0x134   : > { %p937_p2 = scmp.ne.s32.totalorder %s527_s30, %s936_s1  ;;  %p941_p11 = scmp.lt.s32.totalorder %s527_s30, %s1266_s5 }
 0x135   : > { %p942_p0 = scmp.lt.s32.totalorder %s940_s2, %s936_s1 }
 0x136   : > { %p938_p6 = pnand %p937_p2, %p1146_p9 }
 0x137   : > { %p943_p12 = por %p942_p0, %p941_p11 }
 0x138   : > { %p939_p8 = pneg %p938_p6 }
 0x13a   : > { %p944_p4 = pnand %p943_p12, %p939_p8 }
 0x13c   : > { %947 = shalt.err (!%p944_p4)
}
 0x13d   : > { %734 = dma.vmem_to_hbm [thread:$0]  (%p1146_p9), %s530_s6, 128, %s527_s30, %s515_s0  }
 0x13e PF: > { %s541_s24 = sand.u32 1, %s994_s18   ;;  %p1285_p3 = scmp.ne.s32.totalorder %s1272_s27, 0 }
 0x13f   : > { %p1286_p7 = scmp.ge.s32.totalorder %s1014_s23, 2  ;;  %s542_s26 = scalar_lea.sflag [#allocation4], %s541_s24 }
 0x141   : > { %p751_p13 = pnand %p1286_p7, %p1285_p3 }
 0x143   : > { %p752_p5 = pneg %p751_p13 }
 0x145   : > { %989 = dma.done.wait (%p752_p5), %s542_s26, 128  }
 0x146   : > { %991 = vsyncadd (%p752_p5), %s542_s26, 4294967168  ;;  %s25_s23 = sadd.s32 1, %s1014_s23   ;;  %s1287_s18 = smov %s998_s19 }
 0x147   : > { %p22_p10 = scmp.ge.s32.totalorder %s25_s23, 4   ;;  %s1288_s19 = smov %s1002_s20 }
 0x148   : > { %s1289_s20 = smov %s1155_s9  ;;  %s1290_s21 = smov %s1010_s22 }
 0x149   : > { %s1291_s22 = smov %s1293_s17  ;;  %24 = sbr.rel (!%p22_p10) target bundleno = 13 (0xd), region = 111 }
 0x14e   :  { %547 = vsyncpa [#allocation3], 1 }
 0x14f   :  { %549 = vsyncpa [#allocation3 + $0x1], 1 }
 0x150   :  { %550 = vsyncpa [#allocation6], 1 }
 0x151   :  { %552 = vsyncpa [#allocation6 + $0x1], 1 }
 0x152   :  { %553 = vsyncpa [#allocation9], 1 }
 0x153   :  { %554 = vsyncpa [#allocation4], 1 }
 0x154   :  { %556 = vsyncpa [#allocation4 + $0x1], 1 }

</bundles_post_ra>
